<compile_context>
chip_gen: v6e
topology: v6e:2x2x1
jax: 0.10.0
libtpu: 0.0.40
codegen_flags: <defaults>
</compile_context>

<pallas_src>
import math

import jax
import jax.numpy as jnp
from jax.experimental import pallas as pl
from jax.experimental.pallas import tpu as pltpu


# Conservative working-set budget for tile selection (fits under every chip's
# default scoped-VMEM limit, so no vmem_limit_bytes override is required).
_VMEM_BUDGET = 12 * 1024 * 1024


def _round_up(x, m):
    return ((x + m - 1) // m) * m


def _pick_tile(n, desired, align):
    """Largest tile <= desired, multiple of `align`, dividing n exactly when
    possible (so the big adjacency never needs a wrapper-side pad pass).
    Returns (tile, padded_extent)."""
    if n <= desired:
        return n, n                      # single full-extent block, no pad
    t = (desired // align) * align
    while t >= align:
        if n % t == 0:
            return t, n
        t -= align
    t = (desired // align) * align
    return t, _round_up(n, t)            # remainder padding (rare fallback)


def _pick_row_tile(n, desired):
    # Prefer 256-aligned row tiles (v6e/v7x MXU is 2x256x256); fall back to 8.
    if desired >= 256:
        t, npad = _pick_tile(n, desired, 256)
        if npad == n:
            return t, npad
    return _pick_tile(n, desired, 8)


def _xw_kernel(x_ref, w_ref, h_ref):
    # One row tile of the (cheap) feature transform H = X @ W.
    h_ref[...] = jnp.dot(
        x_ref[...], w_ref[...], preferred_element_type=jnp.float32
    ).astype(h_ref.dtype)


def _gcn_resident_kernel(adj_ref, h_ref, b_ref, out_ref):
    # out row-slab = adj_row_slab @ H + bias, with H fully VMEM-resident.
    # Adjacency is read exactly once from HBM.
    out_ref[...] = (
        jnp.dot(adj_ref[...], h_ref[...], preferred_element_type=jnp.float32)
        + b_ref[...]
    ).astype(out_ref.dtype)


def _gcn_ktiled_kernel(adj_ref, h_ref, b_ref, out_ref):
    # Fallback for huge H: K-tiled matmul accumulating directly into the f32
    # output block (resident across the K axis — no extra VMEM scratch).
    k = pl.program_id(1)

    @pl.when(k == 0)
    def _init():
        out_ref[...] = jnp.zeros_like(out_ref)

    out_ref[...] += jnp.dot(
        adj_ref[...], h_ref[...], preferred_element_type=jnp.float32)

    @pl.when(k == pl.num_programs(1) - 1)
    def _finalize():
        out_ref[...] += b_ref[...]


def gcn_layer(adjacency, features, weights, bias=None, *,
              tm=512, tk=512,
              h_resident_bytes=4 * 1024 * 1024,
              vmem_limit_bytes=None):
    """output = adjacency @ (features @ weights) + bias  (GCN forward)."""
    N, D_in = features.shape
    D_in_w, D_out = weights.shape
    assert adjacency.shape == (N, N)
    assert D_in_w == D_in

    # Stream adjacency in whatever dtype it is already stored in — never cast
    # or pad the N x N matrix in the wrapper (that would be an extra full HBM
    # pass over the dominant tensor).  H is produced in the same dtype so the
    # big matmul is homogeneous; accumulation is always f32.
    adj_sz = adjacency.dtype.itemsize
    h_dtype = adjacency.dtype
    h_sz = adj_sz

    d_out_p = _round_up(max(D_out, 1), 128)   # lane-dense output columns
    h_bytes = N * d_out_p * h_sz

    # Resident-H path feasibility: 2x H (double-buffer upper bound) plus one
    # double-buffered (tm, N) adjacency slab and (tm, d_out_p) output must fit
    # the budget with tm >= 8.
    denom = 2 * N * adj_sz + 2 * d_out_p * 4
    head = _VMEM_BUDGET - 2 * h_bytes
    tm_cap = head // denom if head > 0 else 0
    resident = (h_bytes <= h_resident_bytes) and (tm_cap >= 8)

    if resident:
        tk_eff, n_k_p = N, N
        tm_eff, n_rows_p = _pick_row_tile(N, max(8, min(tm, int(tm_cap))))
    else:
        tk_eff, n_k_p = _pick_tile(N, tk, 128)
        tm_des = tm
        while tm_des > 64 and (2 * tm_des * tk_eff * adj_sz
                               + 2 * tk_eff * d_out_p * h_sz
                               + 2 * tm_des * d_out_p * 4) > _VMEM_BUDGET:
            tm_des //= 2   # TODO(synk): tile d_out (extra grid axis) if d_out_p is huge
        tm_eff, n_rows_p = _pick_row_tile(N, tm_des)

    # Pad the big adjacency only when no divisor tile exists (rare; remainder
    # zero-padding is exact because X rows are padded identically below).
    pad_rows, pad_cols = n_rows_p - N, n_k_p - N
    adj_in = adjacency
    if pad_rows or pad_cols:
        adj_in = jnp.pad(adjacency, ((0, pad_rows), (0, pad_cols)))

    # Small arrays: pad freely (cheap) for lane-dense tiles.
    x_in = features.astype(jnp.float32)
    if pad_cols:
        x_in = jnp.pad(x_in, ((0, pad_cols), (0, 0)))
    w_in = weights.astype(jnp.float32)
    if d_out_p != D_out:
        w_in = jnp.pad(w_in, ((0, 0), (0, d_out_p - D_out)))
    if bias is None:
        b_in = jnp.zeros((1, d_out_p), jnp.float32)
    else:
        b_in = jnp.pad(bias.astype(jnp.float32).reshape(1, D_out),
                       ((0, 0), (0, d_out_p - D_out)))

    cp_extra = {}
    if vmem_limit_bytes is not None:
        cp_extra["vmem_limit_bytes"] = vmem_limit_bytes

    # --- step 1: H = X @ W, computed once (O(N*D_in*D_out) << O(N^2*D_out)) --
    tr, n_h_p = _pick_tile(x_in.shape[0], 1024, 8)
    if n_h_p != x_in.shape[0]:
        x_in = jnp.pad(x_in, ((0, n_h_p - x_in.shape[0]), (0, 0)))
    h = pl.pallas_call(
        _xw_kernel,
        out_shape=jax.ShapeDtypeStruct((n_h_p, d_out_p), h_dtype),
        grid_spec=pltpu.PrefetchScalarGridSpec(
            num_scalar_prefetch=0,
            grid=(n_h_p // tr,),
            in_specs=[
                pl.BlockSpec((tr, D_in), lambda i: (i, 0)),
                # NOTE: if W were large (multi-MiB), pipeline_mode=pl.Buffered(1)
                # here would avoid double-buffering a constant block.
                pl.BlockSpec((D_in, d_out_p), lambda i: (0, 0)),
            ],
            out_specs=pl.BlockSpec((tr, d_out_p), lambda i: (i, 0)),
        ),
        compiler_params=pltpu.CompilerParams(
            dimension_semantics=("parallel",), **cp_extra),
    )(x_in, w_in)
    if n_h_p != n_k_p:
        h = h[:n_k_p]

    # --- step 2: out = adjacency @ H + bias ----------------------------------
    grid_rows = n_rows_p // tm_eff
    h_passes = 1 if resident else grid_rows
    cost = pl.CostEstimate(
        flops=int(2 * n_rows_p * n_k_p * d_out_p),
        transcendentals=0,
        bytes_accessed=int(n_rows_p * n_k_p * adj_sz
                           + n_k_p * d_out_p * h_sz * h_passes
                           + n_rows_p * d_out_p * 4),
    )

    if resident:
        out_p = pl.pallas_call(
            _gcn_resident_kernel,
            out_shape=jax.ShapeDtypeStruct((n_rows_p, d_out_p), jnp.float32),
            grid_spec=pltpu.PrefetchScalarGridSpec(
                num_scalar_prefetch=0,
                grid=(grid_rows,),
                in_specs=[
                    pl.BlockSpec((tm_eff, n_k_p), lambda i: (i, 0)),   # adj slab
                    pl.BlockSpec((n_k_p, d_out_p), lambda i: (0, 0)),  # H (resident)
                    pl.BlockSpec((1, d_out_p), lambda i: (0, 0)),      # bias
                ],
                out_specs=pl.BlockSpec((tm_eff, d_out_p), lambda i: (i, 0)),
            ),
            compiler_params=pltpu.CompilerParams(
                dimension_semantics=("parallel",), **cp_extra),
            cost_estimate=cost,
        )(adj_in, h, b_in)
    else:
        out_p = pl.pallas_call(
            _gcn_ktiled_kernel,
            out_shape=jax.ShapeDtypeStruct((n_rows_p, d_out_p), jnp.float32),
            grid_spec=pltpu.PrefetchScalarGridSpec(
                num_scalar_prefetch=0,
                grid=(grid_rows, n_k_p // tk_eff),
                in_specs=[
                    pl.BlockSpec((tm_eff, tk_eff), lambda i, k: (i, k)),    # adj
                    pl.BlockSpec((tk_eff, d_out_p), lambda i, k: (k, 0)),   # H
                    pl.BlockSpec((1, d_out_p), lambda i, k: (0, 0)),        # bias
                ],
                out_specs=pl.BlockSpec((tm_eff, d_out_p), lambda i, k: (i, 0)),
            ),
            compiler_params=pltpu.CompilerParams(
                dimension_semantics=("parallel", "arbitrary"), **cp_extra),
            cost_estimate=cost,
        )(adj_in, h, b_in)

    return out_p[:N, :D_out]


if __name__ == "__main__":
    # Small, tile-friendly synthetic shapes.
    N = 256        # number of graph nodes
    D_in = 64      # input feature dim
    D_out = 32     # output feature dim

    key = jax.random.PRNGKey(0)
    k_adj, k_x, k_w = jax.random.split(key, 3)

    # Synthetic (dense) row-normalized adjacency.
    adjacency = jax.random.uniform(k_adj, (N, N), dtype=jnp.float32)
    adjacency = adjacency / jnp.sum(adjacency, axis=1, keepdims=True)

    # Node features.
    features = jax.random.normal(k_x, (N, D_in), dtype=jnp.float32)

    # Deterministic init mirroring kaiming_uniform_ (the PyTorch source uses
    # fan_in = weights.size(1), i.e. D_out) and zero bias.
    fan_in = D_out
    bound = math.sqrt(2.0) * math.sqrt(3.0 / fan_in)
    weights = jax.random.uniform(
        k_w, (D_in, D_out), dtype=jnp.float32, minval=-bound, maxval=bound)
    bias = jnp.zeros((D_out,), dtype=jnp.float32)

    # Plain-JAX reference of the forward semantics.
    ref = adjacency @ (features @ weights) + bias

    # Default path: H fully VMEM-resident, adjacency read exactly once.
    out = jax.block_until_ready(gcn_layer(adjacency, features, weights, bias))
    assert out.shape == (N, D_out)
    assert jnp.allclose(out, ref, atol=1e-4, rtol=1e-4)

    # Force the K-tiled streaming path (used when H is too big for VMEM).
    out_kt = jax.block_until_ready(
        gcn_layer(adjacency, features, weights, bias,
                  tm=128, tk=128, h_resident_bytes=0))
    assert jnp.allclose(out_kt, ref, atol=1e-4, rtol=1e-4)

    # bf16 path, only exercised with adjacency already stored in bf16 upstream
    # (no wrapper cast pass over the big matrix); f32 accumulation.
    adjacency_bf16 = adjacency.astype(jnp.bfloat16)
    out_bf16 = jax.block_until_ready(
        gcn_layer(adjacency_bf16, features, weights, bias))
    assert jnp.allclose(out_bf16, ref, atol=5e-2, rtol=5e-2)

    print("KERNEL_OK")
</pallas_src>

<mosaic_0001>
module attributes {stable_mosaic.version = 11 : i64} {
  func.func @_xw_kernel(%arg0: i32, %arg1: memref<256x64xf32, #tpu.memory_space<vmem>>, %arg2: memref<64x128xf32, #tpu.memory_space<vmem>>, %arg3: memref<256x128xf32, #tpu.memory_space<vmem>>) attributes {dimension_semantics = [#tpu.dimension_semantics<parallel>], iteration_bounds = array<i64: 1>, scalar_prefetch = 0 : i64, scratch_operands = 0 : i64, tpu.core_type = #tpu.core_type<tc>, window_params = [{transform_indices = @transform_0, window_bounds = array<i64: 256, 64>}, {pipeline_mode = #tpu.pipeline_mode<synchronous>, transform_indices = @transform_1, window_bounds = array<i64: 64, 128>}, {transform_indices = @transform_2, window_bounds = array<i64: 256, 128>}]} {
    %c0 = arith.constant 0 : index
    %c0_0 = arith.constant 0 : index
    %0 = vector.load %arg1[%c0, %c0_0] : memref<256x64xf32, #tpu.memory_space<vmem>>, vector<256x64xf32>
    %c0_1 = arith.constant 0 : index
    %c0_2 = arith.constant 0 : index
    %1 = vector.load %arg2[%c0_1, %c0_2] : memref<64x128xf32, #tpu.memory_space<vmem>>, vector<64x128xf32>
    %cst = arith.constant dense<0.000000e+00> : vector<256x128xf32>
    %2 = tpu.matmul %0, %1, %cst {dimension_numbers = #tpu.dot_dimension_numbers<[1], [0], [0], [1], [0, 0, 1, 1], [], []>} : vector<256x64xf32>, vector<64x128xf32>, vector<256x128xf32> -> vector<256x128xf32>
    %c0_3 = arith.constant 0 : index
    %c0_4 = arith.constant 0 : index
    %3 = vector.load %arg3[%c0_3, %c0_4] : memref<256x128xf32, #tpu.memory_space<vmem>>, vector<256x128xf32>
    tpu.vector_store %arg3[%c0_3, %c0_4], %2 {strides = array<i32>} : memref<256x128xf32, #tpu.memory_space<vmem>>, vector<256x128xf32>,
    return
  }
  func.func @transform_0(%arg0: i32) -> (i32, i32) {
    %c0_i32 = arith.constant 0 : i32
    %c0_i32_0 = arith.constant 0 : i32
    return %arg0, %c0_i32 : i32, i32
  }
  func.func @transform_1(%arg0: i32) -> (i32, i32) {
    %c0_i32 = arith.constant 0 : i32
    %c0_i32_0 = arith.constant 0 : i32
    %c0_i32_1 = arith.constant 0 : i32
    return %c0_i32, %c0_i32_0 : i32, i32
  }
  func.func @transform_2(%arg0: i32) -> (i32, i32) {
    %c0_i32 = arith.constant 0 : i32
    %c0_i32_0 = arith.constant 0 : i32
    return %arg0, %c0_i32 : i32, i32
  }
}

</mosaic_0001>

<bundles_post_ra>
// kernel: tpu_custom_call.1
= control target key start
LH: loop header
LB: loop body
LE: loop exit
PB: predicated region body
PF: predicated region fallthrough
CT: control target
= control target key end

     0   :  { %s772_s0 = inlined_call_operand.vmem [shape: f32[256,64], index: 0, kind: input, shape index: {}]   ;;  %s773_s1 = inlined_call_operand.vmem [shape: f32[64,128], index: 1, kind: input, shape index: {}]   ;;  %s774_s2 = inlined_call_operand.hbm [shape: f32[256,128], index: 2, kind: output, shape index: {}]  }
   0x1   :  { %v51_v0 = vld [vmem:[%s773_s1 + $0x38] sm:$0xff]  ;;  %v50_v1 = vld [vmem:[%s773_s1 + $0x30] sm:$0xff]  ;;  %v49_v2 = vld [vmem:[%s773_s1 + $0x28] sm:$0xff] }
   0x2   :  { %494 = vmatprep.subr.mxu0 %v51_v0  ;;  %558 = vmatprep.subr.mxu1 %v51_v0  ;;  %v48_v3 = vld [vmem:[%s773_s1 + $0x20] sm:$0xff]  ;;  %v47_v4 = vld [vmem:[%s773_s1 + $0x18] sm:$0xff]  ;;  %v46_v5 = vld [vmem:[%s773_s1 + $0x10] sm:$0xff] }
   0x3   :  { %495 = vmatpush3.msra.mxu0 %v51_v0  ;;  %566 = vmatpush3.msra.mxu1 %v51_v0  ;;  %v45_v6 = vld [vmem:[%s773_s1 + $0x8] sm:$0xff]  ;;  %v44_v7 = vld [vmem:[%s773_s1] sm:$0xff] }
   0x4   :  { %496 = vmatprep.subr.mxu0 %v50_v1  ;;  %559 = vmatprep.subr.mxu1 %v50_v1 }
   0x5   :  { %497 = vmatpush3.msra.mxu0 %v50_v1  ;;  %567 = vmatpush3.msra.mxu1 %v50_v1 }
   0x6   :  { %498 = vmatprep.subr.mxu0 %v49_v2  ;;  %560 = vmatprep.subr.mxu1 %v49_v2 }
   0x7   :  { %499 = vmatpush3.msra.mxu0 %v49_v2  ;;  %568 = vmatpush3.msra.mxu1 %v49_v2 }
   0x8   :  { %500 = vmatprep.subr.mxu0 %v48_v3  ;;  %561 = vmatprep.subr.mxu1 %v48_v3 }
   0x9   :  { %501 = vmatpush3.msra.mxu0 %v48_v3  ;;  %569 = vmatpush3.msra.mxu1 %v48_v3 }
   0xa   :  { %502 = vmatprep.subr.mxu0 %v47_v4  ;;  %562 = vmatprep.subr.mxu1 %v47_v4 }
   0xb   :  { %503 = vmatpush3.msra.mxu0 %v47_v4  ;;  %570 = vmatpush3.msra.mxu1 %v47_v4 }
   0xc   :  { %504 = vmatprep.subr.mxu0 %v46_v5  ;;  %563 = vmatprep.subr.mxu1 %v46_v5 }
   0xd   :  { %505 = vmatpush3.msra.mxu0 %v46_v5  ;;  %571 = vmatpush3.msra.mxu1 %v46_v5 }
   0xe   :  { %506 = vmatprep.subr.mxu0 %v45_v6  ;;  %564 = vmatprep.subr.mxu1 %v45_v6 }
   0xf   :  { %7 = vsyncpa [#allocation3], 0  ;;  %507 = vmatpush3.msra.mxu0 %v45_v6  ;;  %572 = vmatpush3.msra.mxu1 %v45_v6  ;;  %v12_v8 = vld [vmem:[%s772_s0] sm:$0xff]  ;;  %vm52_vm0 = vcmask 523264   ;;  %v13_v10 = vld [vmem:[%s772_s0 + $0x8] sm:$0xff] }
  0x10   :  { %v28_v9 = vld [vmem:[%s772_s0 + $0x80] sm:$0xff]  ;;  %508 = vmatprep.subr.mxu0 %v44_v7  ;;  %565 = vmatprep.subr.mxu1 %v44_v7  ;;  %v29_v11 = vld [vmem:[%s772_s0 + $0x88] sm:$0xff]  ;;  %v14_v12 = vld [vmem:[%s772_s0 + $0x10] sm:$0xff] }
  0x11   :  { %509 = vmatpush3.msra.mxu0 %v44_v7  ;;  %573 = vmatpush3.msra.mxu1 %v44_v7  ;;  %v30_v13 = vld [vmem:[%s772_s0 + $0x90] sm:$0xff]  ;;  %v15_v14 = vld [vmem:[%s772_s0 + $0x18] sm:$0xff]  ;;  %v16_v16 = vld [vmem:[%s772_s0 + $0x20] sm:$0xff] }
  0x12   :  { %510 = vmatprep.mubr.msk.f32.mxu0 %vm52_vm0, %v12_v8  ;;  %534 = vmatprep.mubr.msk.f32.mxu1 %vm52_vm0, %v28_v9  ;;  %v31_v15 = vld [vmem:[%s772_s0 + $0x98] sm:$0xff]  ;;  %v32_v17 = vld [vmem:[%s772_s0 + $0xa0] sm:$0xff]  ;;  %v17_v18 = vld [vmem:[%s772_s0 + $0x28] sm:$0xff] }
  0x13   :  { %511 = vmatmul.mubr.msk.f32.vlgmr.msra.gmra.mxu0 %vm52_vm0, %v13_v10  ;;  %535 = vmatmul.mubr.msk.f32.vlgmr.msra.gmra.mxu1 %vm52_vm0, %v29_v11  ;;  %v33_v19 = vld [vmem:[%s772_s0 + $0xa8] sm:$0xff]  ;;  %v18_v20 = vld [vmem:[%s772_s0 + $0x30] sm:$0xff]  ;;  %v19_v22 = vld [vmem:[%s772_s0 + $0x38] sm:$0xff] }
  0x14   :  { %513 = vmatprep.mubr.msk.f32.mxu0 %vm52_vm0, %v14_v12  ;;  %537 = vmatprep.mubr.msk.f32.mxu1 %vm52_vm0, %v30_v13  ;;  %v34_v21 = vld [vmem:[%s772_s0 + $0xb0] sm:$0xff]  ;;  %v35_v23 = vld [vmem:[%s772_s0 + $0xb8] sm:$0xff]  ;;  %v20_v24 = vld [vmem:[%s772_s0 + $0x40] sm:$0xff] }
  0x15   :  { %v36_v25 = vld [vmem:[%s772_s0 + $0xc0] sm:$0xff]  ;;  %v21_v26 = vld [vmem:[%s772_s0 + $0x48] sm:$0xff]  ;;  %v22_v28 = vld [vmem:[%s772_s0 + $0x50] sm:$0xff] }
  0x16   :  { %v37_v27 = vld [vmem:[%s772_s0 + $0xc8] sm:$0xff]  ;;  %v38_v29 = vld [vmem:[%s772_s0 + $0xd0] sm:$0xff]  ;;  %v23_v30 = vld [vmem:[%s772_s0 + $0x58] sm:$0xff] }
  0x17   :  { %514 = vmatmul.mubr.msk.f32.gmra.mxu0 %vm52_vm0, %v15_v14  ;;  %538 = vmatmul.mubr.msk.f32.gmra.mxu1 %vm52_vm0, %v31_v15  ;;  %v39_v31 = vld [vmem:[%s772_s0 + $0xd8] sm:$0xff]  ;;  %v24_v32 = vld [vmem:[%s772_s0 + $0x60] sm:$0xff]  ;;  %v25_v34 = vld [vmem:[%s772_s0 + $0x68] sm:$0xff] }
  0x18   :  { %516 = vmatprep.mubr.msk.f32.mxu0 %vm52_vm0, %v16_v16  ;;  %540 = vmatprep.mubr.msk.f32.mxu1 %vm52_vm0, %v32_v17  ;;  %v40_v33 = vld [vmem:[%s772_s0 + $0xe0] sm:$0xff]  ;;  %v41_v35 = vld [vmem:[%s772_s0 + $0xe8] sm:$0xff]  ;;  %v26_v36 = vld [vmem:[%s772_s0 + $0x70] sm:$0xff] }
  0x19   :  { %v42_v37 = vld [vmem:[%s772_s0 + $0xf0] sm:$0xff]  ;;  %v27_v38 = vld [vmem:[%s772_s0 + $0x78] sm:$0xff] }
  0x1a   :  { %v43_v39 = vld [vmem:[%s772_s0 + $0xf8] sm:$0xff]  ;;  %s599_s0 = smov [#allocation2]  }
  0x1b   :  { %517 = vmatmul.mubr.msk.f32.gmra.mxu0 %vm52_vm0, %v17_v18  ;;  %541 = vmatmul.mubr.msk.f32.gmra.mxu1 %vm52_vm0, %v33_v19  ;;  %s411_s1 = sshll.u32 %s599_s0, 4  ;;  %s412_s1 = int_to_ptr.vmem [resolvable:$true] %s411_s1 }
  0x1c   :  { %519 = vmatprep.mubr.msk.f32.mxu0 %vm52_vm0, %v18_v20  ;;  %543 = vmatprep.mubr.msk.f32.mxu1 %vm52_vm0, %v34_v21  ;;  %s577_s3 = scalar_lea.vmem %s412_s1, 4096  ;;  %p582_p1 = scmp.lt.s32.totalorder %s412_s1, %s412_s1 }
  0x1d   :  { %p578_p0 = scmp.ne.s32.totalorder %s412_s1, %s577_s3  ;;  %p583_p2 = scmp.lt.s32.totalorder %s577_s3, %s577_s3 }
  0x1f   :  { %520 = vmatmul.mubr.msk.f32.gmra.mxu0 %vm52_vm0, %v19_v22  ;;  %544 = vmatmul.mubr.msk.f32.gmra.mxu1 %vm52_vm0, %v35_v23  ;;  %p584_p3 = por %p583_p2, %p582_p1 }
  0x20   :  { %522 = vmatprep.mubr.msk.f32.mxu0 %vm52_vm0, %v20_v24  ;;  %546 = vmatprep.mubr.msk.f32.mxu1 %vm52_vm0, %v36_v25 }
  0x21   :  { %p585_p4 = pnand %p584_p3, %p578_p0 }
  0x23   :  { %523 = vmatmul.mubr.msk.f32.gmra.mxu0 %vm52_vm0, %v21_v26  ;;  %547 = vmatmul.mubr.msk.f32.gmra.mxu1 %vm52_vm0, %v37_v27 }
  0x24   :  { %525 = vmatprep.mubr.msk.f32.mxu0 %vm52_vm0, %v22_v28  ;;  %549 = vmatprep.mubr.msk.f32.mxu1 %vm52_vm0, %v38_v29 }
  0x27   :  { %526 = vmatmul.mubr.msk.f32.gmra.mxu0 %vm52_vm0, %v23_v30  ;;  %550 = vmatmul.mubr.msk.f32.gmra.mxu1 %vm52_vm0, %v39_v31 }
  0x28   :  { %528 = vmatprep.mubr.msk.f32.mxu0 %vm52_vm0, %v24_v32  ;;  %552 = vmatprep.mubr.msk.f32.mxu1 %vm52_vm0, %v40_v33 }
  0x2b   :  { %529 = vmatmul.mubr.msk.f32.gmra.mxu0 %vm52_vm0, %v25_v34  ;;  %553 = vmatmul.mubr.msk.f32.gmra.mxu1 %vm52_vm0, %v41_v35 }
  0x2c   :  { %531 = vmatprep.mubr.msk.f32.mxu0 %vm52_vm0, %v26_v36  ;;  %555 = vmatprep.mubr.msk.f32.mxu1 %vm52_vm0, %v42_v37 }
  0x2f   :  { %532 = vmatmul.mubr.msk.f32.gmra.mxu0 %vm52_vm0, %v27_v38  ;;  %556 = vmatmul.mubr.msk.f32.gmra.mxu1 %vm52_vm0, %v43_v39 }
  0xd3   :  { %v512_v40 = vpop.f32.mrf.mxu0  ;;  %v536_v41 = vpop.f32.mrf.mxu1 }
  0xd4   :  { %375 = vst [vmem:[#allocation2 + $0x8] sm:$0xff] %v512_v40  ;;  %391 = vst [vmem:[#allocation2 + $0x88] sm:$0xff] %v536_v41 }
  0xd5   :  { %v215_v42 = vpop.f32.mrf.mxu0  ;;  %v295_v43 = vpop.f32.mrf.mxu1 }
  0xd6   :  { %374 = vst [vmem:[#allocation2] sm:$0xff] %v215_v42  ;;  %390 = vst [vmem:[#allocation2 + $0x80] sm:$0xff] %v295_v43 }
  0xd7   :  { %v515_v44 = vpop.f32.mrf.mxu0  ;;  %v539_v45 = vpop.f32.mrf.mxu1 }
  0xd8   :  { %377 = vst [vmem:[#allocation2 + $0x18] sm:$0xff] %v515_v44  ;;  %393 = vst [vmem:[#allocation2 + $0x98] sm:$0xff] %v539_v45 }
  0xd9   :  { %v225_v46 = vpop.f32.mrf.mxu0  ;;  %v305_v47 = vpop.f32.mrf.mxu1 }
  0xda   :  { %376 = vst [vmem:[#allocation2 + $0x10] sm:$0xff] %v225_v46  ;;  %392 = vst [vmem:[#allocation2 + $0x90] sm:$0xff] %v305_v47 }
  0xdb   :  { %v518_v48 = vpop.f32.mrf.mxu0  ;;  %v542_v49 = vpop.f32.mrf.mxu1 }
  0xdc   :  { %379 = vst [vmem:[#allocation2 + $0x28] sm:$0xff] %v518_v48  ;;  %395 = vst [vmem:[#allocation2 + $0xa8] sm:$0xff] %v542_v49 }
  0xdd   :  { %v235_v50 = vpop.f32.mrf.mxu0  ;;  %v315_v51 = vpop.f32.mrf.mxu1 }
  0xde   :  { %378 = vst [vmem:[#allocation2 + $0x20] sm:$0xff] %v235_v50  ;;  %394 = vst [vmem:[#allocation2 + $0xa0] sm:$0xff] %v315_v51 }
  0xdf   :  { %v521_v52 = vpop.f32.mrf.mxu0  ;;  %v545_v53 = vpop.f32.mrf.mxu1 }
  0xe0   :  { %381 = vst [vmem:[#allocation2 + $0x38] sm:$0xff] %v521_v52  ;;  %397 = vst [vmem:[#allocation2 + $0xb8] sm:$0xff] %v545_v53 }
  0xe1   :  { %v245_v54 = vpop.f32.mrf.mxu0  ;;  %v325_v55 = vpop.f32.mrf.mxu1 }
  0xe2   :  { %380 = vst [vmem:[#allocation2 + $0x30] sm:$0xff] %v245_v54  ;;  %396 = vst [vmem:[#allocation2 + $0xb0] sm:$0xff] %v325_v55 }
  0xe3   :  { %v524_v56 = vpop.f32.mrf.mxu0  ;;  %v548_v57 = vpop.f32.mrf.mxu1 }
  0xe4   :  { %383 = vst [vmem:[#allocation2 + $0x48] sm:$0xff] %v524_v56  ;;  %399 = vst [vmem:[#allocation2 + $0xc8] sm:$0xff] %v548_v57 }
  0xe5   :  { %v255_v58 = vpop.f32.mrf.mxu0  ;;  %v335_v59 = vpop.f32.mrf.mxu1 }
  0xe6   :  { %382 = vst [vmem:[#allocation2 + $0x40] sm:$0xff] %v255_v58  ;;  %398 = vst [vmem:[#allocation2 + $0xc0] sm:$0xff] %v335_v59 }
  0xe7   :  { %v527_v60 = vpop.f32.mrf.mxu0  ;;  %v551_v61 = vpop.f32.mrf.mxu1 }
  0xe8   :  { %385 = vst [vmem:[#allocation2 + $0x58] sm:$0xff] %v527_v60  ;;  %401 = vst [vmem:[#allocation2 + $0xd8] sm:$0xff] %v551_v61 }
  0xe9   :  { %v265_v62 = vpop.f32.mrf.mxu0  ;;  %v345_v63 = vpop.f32.mrf.mxu1 }
  0xea   :  { %384 = vst [vmem:[#allocation2 + $0x50] sm:$0xff] %v265_v62  ;;  %400 = vst [vmem:[#allocation2 + $0xd0] sm:$0xff] %v345_v63 }
  0xeb   :  { %v530_v0 = vpop.f32.mrf.mxu0  ;;  %v554_v1 = vpop.f32.mrf.mxu1 }
  0xec   :  { %387 = vst [vmem:[#allocation2 + $0x68] sm:$0xff] %v530_v0  ;;  %403 = vst [vmem:[#allocation2 + $0xe8] sm:$0xff] %v554_v1 }
  0xed   :  { %v275_v2 = vpop.f32.mrf.mxu0  ;;  %v355_v3 = vpop.f32.mrf.mxu1 }
  0xee   :  { %386 = vst [vmem:[#allocation2 + $0x60] sm:$0xff] %v275_v2  ;;  %402 = vst [vmem:[#allocation2 + $0xe0] sm:$0xff] %v355_v3 }
  0xef   :  { %v533_v4 = vpop.f32.mrf.mxu0  ;;  %v557_v5 = vpop.f32.mrf.mxu1 }
  0xf0   :  { %389 = vst [vmem:[#allocation2 + $0x78] sm:$0xff] %v533_v4  ;;  %405 = vst [vmem:[#allocation2 + $0xf8] sm:$0xff] %v557_v5 }
  0xf1   :  { %v285_v6 = vpop.f32.mrf.mxu0  ;;  %v365_v7 = vpop.f32.mrf.mxu1 }
  0xf2   :  { %388 = vst [vmem:[#allocation2 + $0x70] sm:$0xff] %v285_v6  ;;  %404 = vst [vmem:[#allocation2 + $0xf0] sm:$0xff] %v365_v7 }
  0xf3   :  { %588 = shalt.err (!%p585_p4)
}
  0xf4   :  { %s600_s4 = smov 128   ;;  %s601_s5 = smov 8  }
  0xf5   :  { %417 = dma.vmem_to_hbm [thread:$0]  %s412_s1, 4096, %s774_s2, [#allocation3], %s600_s4, %s600_s4, %s601_s5  }
  0xf6   :  { %597 = dma.done.wait [#allocation3], 4096  }
  0xf7   :  { %598 = vsyncadd [#allocation3], 4294963200 }
  0xf8   :  { %421 = vsyncpa [#allocation3], 1 }

</bundles_post_ra>
